<compile_context>
chip_gen: v5e
topology: v5e:2x2
jax: 0.10.0
libtpu: 0.0.40
codegen_flags: <defaults>
</compile_context>

<pallas_src>
import jax
import jax.numpy as jnp
from jax.experimental import pallas as pl
from jax.experimental.pallas import tpu as pltpu


# ----------------------------------------------------------------------------
# Fused kernel: backbone + (folded) latent transform + INR + per-batch SSE.
# One grid step == one batch element (grid axis "parallel" -> 2 TCs on v7x).
# ----------------------------------------------------------------------------
def _fused_kernel(x_ref, coord_ref, tgt_ref,
                  wc_ref, bc_ref, wfold_ref, bfold_ref,
                  w1_ref, wz_ref, b1_ref, w2_ref, b2_ref,
                  z_ref, pred_ref, loss_ref):
    # ---- backbone: 1x1 conv channel mix on the MXU (bf16 operands, f32 accum) -------
    x = x_ref[...].astype(jnp.bfloat16)                                   # [HW, C]
    feat = jnp.dot(x, wc_ref[...], preferred_element_type=jnp.float32)    # [HW, F]
    feat = jnp.maximum(feat + bc_ref[...], 0.0)                           # ReLU (f32)

    pooled = jnp.mean(feat, axis=0, keepdims=True)                        # [1, F]

    # folded backbone-head + latent_transform: single linear (no nonlinearity between)
    z = jnp.dot(pooled.astype(jnp.bfloat16), wfold_ref[...],
                preferred_element_type=jnp.float32) + bfold_ref[...]      # [1, Dz]
    z_ref[...] = z

    # ---- INR: split coord / latent paths (no concat, no z replication) --------------
    zh = jnp.dot(z.astype(jnp.bfloat16), wz_ref[...],
                 preferred_element_type=jnp.float32)                      # [1, Hh]
    ch = jnp.dot(coord_ref[...].astype(jnp.bfloat16), w1_ref[...],
                 preferred_element_type=jnp.float32)                      # [K, Hh]
    h = jnp.maximum(ch + zh + b1_ref[...], 0.0)                           # [K, Hh]
    pred = jnp.dot(h.astype(jnp.bfloat16), w2_ref[...],
                   preferred_element_type=jnp.float32) + b2_ref[...]      # [K, Ct]
    pred_ref[...] = pred

    # per-batch partial sum of squared errors; wrapper sums over B and normalizes
    diff = pred - tgt_ref[...]
    loss_ref[...] = jnp.sum(diff * diff, keepdims=True)                   # [1, 1]


def fused_forward(x_bhwc, coord_sub, tgt_sub, w):
    """x_bhwc: [B, HW, C], coord_sub: [B, K, 3], tgt_sub: [B, K, Ct]
       -> (z [B, Dz], pred [B, K, Ct], loss_partials [B, 1, 1])."""
    B, HW, C = x_bhwc.shape
    K = coord_sub.shape[1]
    Ct = tgt_sub.shape[-1]
    Dz = w["wfold"].shape[1]

    def batched(shape):
        # leading batch dim squeezed, trailing dims full-extent
        return pl.BlockSpec((None,) + shape, lambda b: (b,) + (0,) * len(shape))

    def full2d(a):
        return pl.BlockSpec(a.shape, lambda b: (0, 0))     # weights: constant block

    ins = (x_bhwc, coord_sub, tgt_sub,
           w["wc"], w["bc"], w["wfold"], w["bfold"],
           w["w1"], w["wz"], w["b1"], w["w2"], w["b2"])

    z, pred, loss_part = pl.pallas_call(
        _fused_kernel,
        out_shape=(
            jax.ShapeDtypeStruct((B, 1, Dz), jnp.float32),
            jax.ShapeDtypeStruct((B, K, Ct), jnp.float32),
            jax.ShapeDtypeStruct((B, 1, 1), jnp.float32),
        ),
        grid=(B,),
        in_specs=[
            batched((HW, C)),
            batched((K, 3)),
            batched((K, Ct)),
            full2d(w["wc"]), full2d(w["bc"]),
            full2d(w["wfold"]), full2d(w["bfold"]),
            full2d(w["w1"]), full2d(w["wz"]),
            full2d(w["b1"]), full2d(w["w2"]), full2d(w["b2"]),
        ],
        out_specs=(
            batched((1, Dz)),
            batched((K, Ct)),
            batched((1, 1)),
        ),
        compiler_params=pltpu.CompilerParams(
            dimension_semantics=("parallel",)),             # v7x: one batch elem per TC
    )(*ins)
    return z.reshape(B, Dz), pred, loss_part


# ----------------------------------------------------------------------------
# Glue (plain JAX): subsampling + coord generation at sampled points only.
# Mirrors BaseModel.sample_coord_input + SubSampler without materializing the
# full [B, D, H, W, 3] coordinate / noise volume.
# ----------------------------------------------------------------------------
def subsample_targets(key, target, num_points):
    """target: [B, Ct, D, H, W] -> (idx [B,K] int32, targets [B,K,Ct])."""
    B, Ct, D, H, W = target.shape
    N = D * H * W
    tgt_flat = target.reshape(B, Ct, N)
    keys = jax.random.split(key, B)
    idx = jax.vmap(
        lambda k: jax.random.choice(k, N, (num_points,), replace=False))(keys)
    tgt_sub = jnp.take_along_axis(tgt_flat, idx[:, None, :], axis=2)   # [B,Ct,K]
    return idx, jnp.transpose(tgt_sub, (0, 2, 1))                      # [B,K,Ct]


def coords_from_indices(key, idx, dims, coord_range=(-1.0, 1.0)):
    """Linspace-grid coords + uniform noise only at the sampled flat indices."""
    D, H, W = dims
    lo, hi = coord_range
    d_i = idx // (H * W)
    h_i = (idx // W) % H
    w_i = idx % W

    def lin(i, size):
        return lo + (hi - lo) * i.astype(jnp.float32) / (size - 1)

    coord = jnp.stack([lin(d_i, D), lin(h_i, H), lin(w_i, W)], axis=-1)  # [B,K,3]
    unif = jax.random.uniform(key, coord.shape, dtype=jnp.float32)
    # reference scales noise for ALL axes by len_coord_range / shape[0] (== D)
    coord = coord + (unif - 0.5) * (hi - lo) / D
    return coord


def init_params(key, C, F, Dz, Hh, Ct):
    ks = jax.random.split(key, 6)
    n = lambda k, s: (jax.random.normal(k, s) / jnp.sqrt(s[0])).astype(jnp.float32)
    return {
        # backbone (1x1 conv as channel-mix + pooled linear)
        "wc":  n(ks[0], (C, F)),
        "bc":  jnp.zeros((1, F), jnp.float32),
        "wbb": n(ks[1], (F, Dz)),
        "bbb": jnp.zeros((1, Dz), jnp.float32),
        # latent transform
        "wlt": n(ks[2], (Dz, Dz)),
        "blt": jnp.zeros((1, Dz), jnp.float32),
        # INR MLP
        "w1":  n(ks[3], (3, Hh)),
        "wz":  n(ks[4], (Dz, Hh)),
        "b1":  jnp.zeros((1, Hh), jnp.float32),
        "w2":  n(ks[5], (Hh, Ct)),
        "b2":  jnp.zeros((1, Ct), jnp.float32),
    }


def pack_params(params):
    """Fold backbone head + latent transform; cast MXU operands to bf16, biases stay f32."""
    wfold = jnp.dot(params["wbb"], params["wlt"])                    # [F, Dz]
    bfold = jnp.dot(params["bbb"], params["wlt"]) + params["blt"]    # [1, Dz]
    bf = jnp.bfloat16
    return {
        "wc":    params["wc"].astype(bf),
        "bc":    params["bc"],
        "wfold": wfold.astype(bf),
        "bfold": bfold,
        "w1":    params["w1"].astype(bf),
        "wz":    params["wz"].astype(bf),
        "b1":    params["b1"],
        "w2":    params["w2"].astype(bf),
        "b2":    params["b2"],
    }


def base_model_forward(params, x, target, key, num_points, coord_range=(-1.0, 1.0)):
    """Mirrors BaseModel.forward: returns loss, z, prediction, subsampled coords/targets."""
    B, C, Hi, Wi = x.shape
    Ct, D, H, W = target.shape[1:]
    K = num_points
    k_coord, k_sub = jax.random.split(key)

    # subsample indices + targets; generate coords/noise only at the K chosen points
    idx, tgt_sub = subsample_targets(k_sub, target, K)                     # [B,K], [B,K,Ct]
    coord_sub = coords_from_indices(k_coord, idx, (D, H, W), coord_range)  # [B,K,3]

    # channels-last backbone input (one tiny transpose; no zero-padded slabs)
    x_bhwc = jnp.transpose(x, (0, 2, 3, 1)).reshape(B, Hi * Wi, C)

    w = pack_params(params)
    z, pred, loss_part = fused_forward(x_bhwc, coord_sub, tgt_sub, w)
    loss = jnp.sum(loss_part) / float(B * K * Ct)

    return {
        "loss": loss,
        "backbone_out": z,
        "inr_prediction": pred,
        "subsampled_coords": coord_sub,
        "subsampled_targets": tgt_sub,
    }


if __name__ == "__main__":
    # small, lane-aligned shapes
    B, C, Hi, Wi = 2, 4, 16, 16        # backbone input image (NCHW)
    Ct, D, H, W = 2, 4, 8, 8           # target volume [B, Ct, D, H, W]
    Dz = F = Hh = 128                  # latent / feature / hidden dims (128-aligned)
    K = 128                            # subsampled points per batch element

    key = jax.random.PRNGKey(0)
    k_param, k_x, k_t, k_fwd = jax.random.split(key, 4)

    params = init_params(k_param, C, F, Dz, Hh, Ct)
    x = jax.random.normal(k_x, (B, C, Hi, Wi), dtype=jnp.float32)
    target = jax.random.normal(k_t, (B, Ct, D, H, W), dtype=jnp.float32)

    forward = jax.jit(base_model_forward, static_argnames=("num_points",))
    out = forward(params, x, target, k_fwd, num_points=K)
    jax.block_until_ready(out)

    assert out["backbone_out"].shape == (B, Dz)
    assert out["inr_prediction"].shape == (B, K, Ct)
    assert out["subsampled_coords"].shape == (B, K, 3)
    assert out["subsampled_targets"].shape == (B, K, Ct)
    assert out["loss"].shape == () and jnp.isfinite(out["loss"])
    print("KERNEL_OK")
</pallas_src>

<mosaic_0001>
module attributes {stable_mosaic.version = 11 : i64} {
  func.func @_fused_kernel(%arg0: i32, %arg1: memref<1x256x4xf32, #tpu.memory_space<vmem>>, %arg2: memref<1x128x3xf32, #tpu.memory_space<vmem>>, %arg3: memref<1x128x2xf32, #tpu.memory_space<vmem>>, %arg4: memref<4x128xbf16, #tpu.memory_space<vmem>>, %arg5: memref<1x128xf32, #tpu.memory_space<vmem>>, %arg6: memref<128x128xbf16, #tpu.memory_space<vmem>>, %arg7: memref<1x128xf32, #tpu.memory_space<vmem>>, %arg8: memref<3x128xbf16, #tpu.memory_space<vmem>>, %arg9: memref<128x128xbf16, #tpu.memory_space<vmem>>, %arg10: memref<1x128xf32, #tpu.memory_space<vmem>>, %arg11: memref<128x2xbf16, #tpu.memory_space<vmem>>, %arg12: memref<1x2xf32, #tpu.memory_space<vmem>>, %arg13: memref<1x1x128xf32, #tpu.memory_space<vmem>>, %arg14: memref<1x128x2xf32, #tpu.memory_space<vmem>>, %arg15: memref<1x1x1xf32, #tpu.memory_space<vmem>>) attributes {dimension_semantics = [#tpu.dimension_semantics<parallel>], iteration_bounds = array<i64: 2>, scalar_prefetch = 0 : i64, scratch_operands = 0 : i64, tpu.core_type = #tpu.core_type<tc>, window_params = [{transform_indices = @transform_0, window_bounds = array<i64: 1, 256, 4>}, {transform_indices = @transform_1, window_bounds = array<i64: 1, 128, 3>}, {transform_indices = @transform_2, window_bounds = array<i64: 1, 128, 2>}, {pipeline_mode = #tpu.pipeline_mode<synchronous>, transform_indices = @transform_3, window_bounds = array<i64: 4, 128>}, {pipeline_mode = #tpu.pipeline_mode<synchronous>, transform_indices = @transform_4, window_bounds = array<i64: 1, 128>}, {pipeline_mode = #tpu.pipeline_mode<synchronous>, transform_indices = @transform_5, window_bounds = array<i64: 128, 128>}, {pipeline_mode = #tpu.pipeline_mode<synchronous>, transform_indices = @transform_6, window_bounds = array<i64: 1, 128>}, {pipeline_mode = #tpu.pipeline_mode<synchronous>, transform_indices = @transform_7, window_bounds = array<i64: 3, 128>}, {pipeline_mode = #tpu.pipeline_mode<synchronous>, transform_indices = @transform_8, window_bounds = array<i64: 128, 128>}, {pipeline_mode = #tpu.pipeline_mode<synchronous>, transform_indices = @transform_9, window_bounds = array<i64: 1, 128>}, {pipeline_mode = #tpu.pipeline_mode<synchronous>, transform_indices = @transform_10, window_bounds = array<i64: 128, 2>}, {pipeline_mode = #tpu.pipeline_mode<synchronous>, transform_indices = @transform_11, window_bounds = array<i64: 1, 2>}, {transform_indices = @transform_12, window_bounds = array<i64: 1, 1, 128>}, {transform_indices = @transform_13, window_bounds = array<i64: 1, 128, 2>}, {transform_indices = @transform_14, window_bounds = array<i64: 1, 1, 1>}]} {
    %c0 = arith.constant 0 : index
    %c0_0 = arith.constant 0 : index
    %c0_1 = arith.constant 0 : index
    %0 = vector.load %arg1[%c0, %c0_0, %c0_1] : memref<1x256x4xf32, #tpu.memory_space<vmem>>, vector<1x256x4xf32>
    %1 = vector.shape_cast %0 : vector<1x256x4xf32> to vector<256x4xf32>
    %2 = arith.truncf %1 : vector<256x4xf32> to vector<256x4xbf16>
    %c0_2 = arith.constant 0 : index
    %c0_3 = arith.constant 0 : index
    %3 = vector.load %arg4[%c0_2, %c0_3] : memref<4x128xbf16, #tpu.memory_space<vmem>>, vector<4x128xbf16>
    %cst = arith.constant dense<0.000000e+00> : vector<256x128xf32>
    %4 = tpu.matmul %2, %3, %cst {dimension_numbers = #tpu.dot_dimension_numbers<[1], [0], [0], [1], [0, 0, 1, 1], [], []>} : vector<256x4xbf16>, vector<4x128xbf16>, vector<256x128xf32> -> vector<256x128xf32>
    %c0_4 = arith.constant 0 : index
    %c0_5 = arith.constant 0 : index
    %5 = vector.load %arg5[%c0_4, %c0_5] : memref<1x128xf32, #tpu.memory_space<vmem>>, vector<1x128xf32>
    %6 = vector.broadcast %5 : vector<1x128xf32> to vector<256x128xf32>
    %7 = arith.addf %4, %6 : vector<256x128xf32>
    %cst_6 = arith.constant 0.000000e+00 : f32
    %8 = vector.broadcast %cst_6 : f32 to vector<256x128xf32>
    %9 = arith.maximumf %7, %8 : vector<256x128xf32>
    %cst_7 = arith.constant dense<0.000000e+00> : vector<128xf32>
    %10 = vector.multi_reduction <add>, %9, %cst_7 [0] : vector<256x128xf32> to vector<128xf32>
    %11 = vector.shape_cast %10 : vector<128xf32> to vector<1x128xf32>
    %cst_8 = arith.constant 2.560000e+02 : f32
    %12 = vector.broadcast %cst_8 : f32 to vector<1x128xf32>
    %13 = arith.divf %11, %12 : vector<1x128xf32>
    %14 = arith.truncf %13 : vector<1x128xf32> to vector<1x128xbf16>
    %c0_9 = arith.constant 0 : index
    %c0_10 = arith.constant 0 : index
    %15 = vector.load %arg6[%c0_9, %c0_10] : memref<128x128xbf16, #tpu.memory_space<vmem>>, vector<128x128xbf16>
    %cst_11 = arith.constant dense<0.000000e+00> : vector<1x128xf32>
    %16 = tpu.matmul %14, %15, %cst_11 {dimension_numbers = #tpu.dot_dimension_numbers<[1], [0], [0], [1], [0, 0, 1, 1], [], []>} : vector<1x128xbf16>, vector<128x128xbf16>, vector<1x128xf32> -> vector<1x128xf32>
    %c0_12 = arith.constant 0 : index
    %c0_13 = arith.constant 0 : index
    %17 = vector.load %arg7[%c0_12, %c0_13] : memref<1x128xf32, #tpu.memory_space<vmem>>, vector<1x128xf32>
    %18 = arith.addf %16, %17 : vector<1x128xf32>
    %c0_14 = arith.constant 0 : index
    %c0_15 = arith.constant 0 : index
    %c0_16 = arith.constant 0 : index
    %19 = vector.load %arg13[%c0_14, %c0_15, %c0_16] : memref<1x1x128xf32, #tpu.memory_space<vmem>>, vector<1x1x128xf32>
    %20 = vector.shape_cast %19 : vector<1x1x128xf32> to vector<1x128xf32>
    %21 = vector.shape_cast %18 : vector<1x128xf32> to vector<1x1x128xf32>
    tpu.vector_store %arg13[%c0_14, %c0_15, %c0_16], %21 {strides = array<i32>} : memref<1x1x128xf32, #tpu.memory_space<vmem>>, vector<1x1x128xf32>,
    %22 = arith.truncf %18 : vector<1x128xf32> to vector<1x128xbf16>
    %c0_17 = arith.constant 0 : index
    %c0_18 = arith.constant 0 : index
    %23 = vector.load %arg9[%c0_17, %c0_18] : memref<128x128xbf16, #tpu.memory_space<vmem>>, vector<128x128xbf16>
    %cst_19 = arith.constant dense<0.000000e+00> : vector<1x128xf32>
    %24 = tpu.matmul %22, %23, %cst_19 {dimension_numbers = #tpu.dot_dimension_numbers<[1], [0], [0], [1], [0, 0, 1, 1], [], []>} : vector<1x128xbf16>, vector<128x128xbf16>, vector<1x128xf32> -> vector<1x128xf32>
    %c0_20 = arith.constant 0 : index
    %c0_21 = arith.constant 0 : index
    %c0_22 = arith.constant 0 : index
    %25 = vector.load %arg2[%c0_20, %c0_21, %c0_22] : memref<1x128x3xf32, #tpu.memory_space<vmem>>, vector<1x128x3xf32>
    %26 = vector.shape_cast %25 : vector<1x128x3xf32> to vector<128x3xf32>
    %27 = arith.truncf %26 : vector<128x3xf32> to vector<128x3xbf16>
    %c0_23 = arith.constant 0 : index
    %c0_24 = arith.constant 0 : index
    %28 = vector.load %arg8[%c0_23, %c0_24] : memref<3x128xbf16, #tpu.memory_space<vmem>>, vector<3x128xbf16>
    %cst_25 = arith.constant dense<0.000000e+00> : vector<128x128xf32>
    %29 = tpu.matmul %27, %28, %cst_25 {dimension_numbers = #tpu.dot_dimension_numbers<[1], [0], [0], [1], [0, 0, 1, 1], [], []>} : vector<128x3xbf16>, vector<3x128xbf16>, vector<128x128xf32> -> vector<128x128xf32>
    %30 = vector.broadcast %24 : vector<1x128xf32> to vector<128x128xf32>
    %31 = arith.addf %29, %30 : vector<128x128xf32>
    %c0_26 = arith.constant 0 : index
    %c0_27 = arith.constant 0 : index
    %32 = vector.load %arg10[%c0_26, %c0_27] : memref<1x128xf32, #tpu.memory_space<vmem>>, vector<1x128xf32>
    %33 = vector.broadcast %32 : vector<1x128xf32> to vector<128x128xf32>
    %34 = arith.addf %31, %33 : vector<128x128xf32>
    %cst_28 = arith.constant 0.000000e+00 : f32
    %35 = vector.broadcast %cst_28 : f32 to vector<128x128xf32>
    %36 = arith.maximumf %34, %35 : vector<128x128xf32>
    %37 = arith.truncf %36 : vector<128x128xf32> to vector<128x128xbf16>
    %c0_29 = arith.constant 0 : index
    %c0_30 = arith.constant 0 : index
    %38 = vector.load %arg11[%c0_29, %c0_30] : memref<128x2xbf16, #tpu.memory_space<vmem>>, vector<128x2xbf16>
    %cst_31 = arith.constant dense<0.000000e+00> : vector<128x2xf32>
    %39 = tpu.matmul %37, %38, %cst_31 {dimension_numbers = #tpu.dot_dimension_numbers<[1], [0], [0], [1], [0, 0, 1, 1], [], []>} : vector<128x128xbf16>, vector<128x2xbf16>, vector<128x2xf32> -> vector<128x2xf32>
    %c0_32 = arith.constant 0 : index
    %c0_33 = arith.constant 0 : index
    %40 = vector.load %arg12[%c0_32, %c0_33] : memref<1x2xf32, #tpu.memory_space<vmem>>, vector<1x2xf32>
    %41 = vector.broadcast %40 : vector<1x2xf32> to vector<128x2xf32>
    %42 = arith.addf %39, %41 : vector<128x2xf32>
    %c0_34 = arith.constant 0 : index
    %c0_35 = arith.constant 0 : index
    %c0_36 = arith.constant 0 : index
    %43 = vector.load %arg14[%c0_34, %c0_35, %c0_36] : memref<1x128x2xf32, #tpu.memory_space<vmem>>, vector<1x128x2xf32>
    %44 = vector.shape_cast %43 : vector<1x128x2xf32> to vector<128x2xf32>
    %45 = vector.shape_cast %42 : vector<128x2xf32> to vector<1x128x2xf32>
    tpu.vector_store %arg14[%c0_34, %c0_35, %c0_36], %45 {strides = array<i32>} : memref<1x128x2xf32, #tpu.memory_space<vmem>>, vector<1x128x2xf32>,
    %c0_37 = arith.constant 0 : index
    %c0_38 = arith.constant 0 : index
    %c0_39 = arith.constant 0 : index
    %46 = vector.load %arg3[%c0_37, %c0_38, %c0_39] : memref<1x128x2xf32, #tpu.memory_space<vmem>>, vector<1x128x2xf32>
    %47 = vector.shape_cast %46 : vector<1x128x2xf32> to vector<128x2xf32>
    %48 = arith.subf %42, %47 : vector<128x2xf32>
    %49 = arith.mulf %48, %48 : vector<128x2xf32>
    %50 = vector.shape_cast %49 : vector<128x2xf32> to vector<1x128x2xf32>
    %cst_40 = arith.constant dense<0.000000e+00> : vector<1xf32>
    %51 = vector.multi_reduction <add>, %50, %cst_40 [1, 2] : vector<1x128x2xf32> to vector<1xf32>
    %52 = vector.shape_cast %51 : vector<1xf32> to vector<1x1x1xf32>
    %53 = vector.extract %52[0, 0, 0] : f32 from vector<1x1x1xf32>
    %54 = vector.broadcast %53 : f32 to vector<1x1xf32>
    %c0_41 = arith.constant 0 : index
    %c0_42 = arith.constant 0 : index
    %c0_43 = arith.constant 0 : index
    %55 = vector.load %arg15[%c0_41, %c0_42, %c0_43] : memref<1x1x1xf32, #tpu.memory_space<vmem>>, vector<1x1x1xf32>
    %56 = vector.shape_cast %55 : vector<1x1x1xf32> to vector<1x1xf32>
    %57 = vector.shape_cast %54 : vector<1x1xf32> to vector<1x1x1xf32>
    tpu.vector_store %arg15[%c0_41, %c0_42, %c0_43], %57 {strides = array<i32>} : memref<1x1x1xf32, #tpu.memory_space<vmem>>, vector<1x1x1xf32>,
    return
  }
  func.func @transform_0(%arg0: i32) -> (i32, i32, i32) {
    %c0_i32 = arith.constant 0 : i32
    %c0_i32_0 = arith.constant 0 : i32
    %c0_i32_1 = arith.constant 0 : i32
    return %arg0, %c0_i32, %c0_i32_0 : i32, i32, i32
  }
  func.func @transform_1(%arg0: i32) -> (i32, i32, i32) {
    %c0_i32 = arith.constant 0 : i32
    %c0_i32_0 = arith.constant 0 : i32
    %c0_i32_1 = arith.constant 0 : i32
    return %arg0, %c0_i32, %c0_i32_0 : i32, i32, i32
  }
  func.func @transform_2(%arg0: i32) -> (i32, i32, i32) {
    %c0_i32 = arith.constant 0 : i32
    %c0_i32_0 = arith.constant 0 : i32
    %c0_i32_1 = arith.constant 0 : i32
    return %arg0, %c0_i32, %c0_i32_0 : i32, i32, i32
  }
  func.func @transform_3(%arg0: i32) -> (i32, i32) {
    %c0_i32 = arith.constant 0 : i32
    %c0_i32_0 = arith.constant 0 : i32
    %c0_i32_1 = arith.constant 0 : i32
    return %c0_i32, %c0_i32_0 : i32, i32
  }
  func.func @transform_4(%arg0: i32) -> (i32, i32) {
    %c0_i32 = arith.constant 0 : i32
    %c0_i32_0 = arith.constant 0 : i32
    %c0_i32_1 = arith.constant 0 : i32
    return %c0_i32, %c0_i32_0 : i32, i32
  }
  func.func @transform_5(%arg0: i32) -> (i32, i32) {
    %c0_i32 = arith.constant 0 : i32
    %c0_i32_0 = arith.constant 0 : i32
    %c0_i32_1 = arith.constant 0 : i32
    return %c0_i32, %c0_i32_0 : i32, i32
  }
  func.func @transform_6(%arg0: i32) -> (i32, i32) {
    %c0_i32 = arith.constant 0 : i32
    %c0_i32_0 = arith.constant 0 : i32
    %c0_i32_1 = arith.constant 0 : i32
    return %c0_i32, %c0_i32_0 : i32, i32
  }
  func.func @transform_7(%arg0: i32) -> (i32, i32) {
    %c0_i32 = arith.constant 0 : i32
    %c0_i32_0 = arith.constant 0 : i32
    %c0_i32_1 = arith.constant 0 : i32
    return %c0_i32, %c0_i32_0 : i32, i32
  }
  func.func @transform_8(%arg0: i32) -> (i32, i32) {
    %c0_i32 = arith.constant 0 : i32
    %c0_i32_0 = arith.constant 0 : i32
    %c0_i32_1 = arith.constant 0 : i32
    return %c0_i32, %c0_i32_0 : i32, i32
  }
  func.func @transform_9(%arg0: i32) -> (i32, i32) {
    %c0_i32 = arith.constant 0 : i32
    %c0_i32_0 = arith.constant 0 : i32
    %c0_i32_1 = arith.constant 0 : i32
    return %c0_i32, %c0_i32_0 : i32, i32
  }
  func.func @transform_10(%arg0: i32) -> (i32, i32) {
    %c0_i32 = arith.constant 0 : i32
    %c0_i32_0 = arith.constant 0 : i32
    %c0_i32_1 = arith.constant 0 : i32
    return %c0_i32, %c0_i32_0 : i32, i32
  }
  func.func @transform_11(%arg0: i32) -> (i32, i32) {
    %c0_i32 = arith.constant 0 : i32
    %c0_i32_0 = arith.constant 0 : i32
    %c0_i32_1 = arith.constant 0 : i32
    return %c0_i32, %c0_i32_0 : i32, i32
  }
  func.func @transform_12(%arg0: i32) -> (i32, i32, i32) {
    %c0_i32 = arith.constant 0 : i32
    %c0_i32_0 = arith.constant 0 : i32
    %c0_i32_1 = arith.constant 0 : i32
    return %arg0, %c0_i32, %c0_i32_0 : i32, i32, i32
  }
  func.func @transform_13(%arg0: i32) -> (i32, i32, i32) {
    %c0_i32 = arith.constant 0 : i32
    %c0_i32_0 = arith.constant 0 : i32
    %c0_i32_1 = arith.constant 0 : i32
    return %arg0, %c0_i32, %c0_i32_0 : i32, i32, i32
  }
  func.func @transform_14(%arg0: i32) -> (i32, i32, i32) {
    %c0_i32 = arith.constant 0 : i32
    %c0_i32_0 = arith.constant 0 : i32
    %c0_i32_1 = arith.constant 0 : i32
    return %arg0, %c0_i32, %c0_i32_0 : i32, i32, i32
  }
}

</mosaic_0001>

<bundles_post_ra>
// kernel: base_model_forward.1
= control target key start
LH: loop header
LB: loop body
LE: loop exit
PB: predicated region body
PF: predicated region fallthrough
CT: control target
= control target key end

     0   :  { %s2261_s0 = inlined_call_operand.vmem [shape: f32[2,256,4], index: 0, kind: input, shape index: {}]   ;;  %s2262_s1 = inlined_call_operand.vmem [shape: f32[2,128,3], index: 1, kind: input, shape index: {}]   ;;  %s2263_s2 = inlined_call_operand.vmem [shape: f32[2,128,2], index: 2, kind: input, shape index: {}]   ;;  %s2264_s3 = inlined_call_operand.vmem [shape: bf16[4,128], index: 3, kind: input, shape index: {}]   ;;  %s2265_s4 = inlined_call_operand.vmem [shape: f32[1,128], index: 4, kind: input, shape index: {}]   ;;  %s2266_s5 = inlined_call_operand.vmem [shape: bf16[128,128], index: 5, kind: input, shape index: {}]   ;;  %s2267_s6 = inlined_call_operand.vmem [shape: f32[1,128], index: 6, kind: input, shape index: {}]   ;;  %s2268_s7 = inlined_call_operand.vmem [shape: bf16[3,128], index: 7, kind: input, shape index: {}]   ;;  %s2269_s8 = inlined_call_operand.vmem [shape: bf16[128,128], index: 8, kind: input, shape index: {}]   ;;  %s2270_s9 = inlined_call_operand.vmem [shape: f32[1,128], index: 9, kind: input, shape index: {}]   ;;  %s2271_s10 = inlined_call_operand.vmem [shape: bf16[128,2], index: 10, kind: input, shape index: {}]   ;;  %s2272_s11 = inlined_call_operand.vmem [shape: f32[1,2], index: 11, kind: input, shape index: {}]   ;;  %s2273_s12 = inlined_call_operand.hbm [shape: f32[2,1,128], index: 12, kind: output, shape index: {0}]   ;;  %s2274_s13 = inlined_call_operand.vmem [shape: f32[2,128,2], index: 13, kind: output, shape index: {1}]   ;;  %s2275_s14 = inlined_call_operand.vmem [shape: f32[2,1,1], index: 14, kind: output, shape index: {2}]  }
   0x1   :  { %2277 = sst [smem:[#allocation5_spill]] %s2261_s0 }
   0x2   :  { %2278 = sst [smem:[#allocation6_spill]] %s2262_s1 }
   0x3   :  { %2279 = sst [smem:[#allocation7_spill]] %s2263_s2 }
   0x4   :  { %2280 = sst [smem:[#allocation8_spill]] %s2264_s3 }
   0x5   :  { %2281 = sst [smem:[#allocation9_spill]] %s2265_s4 }
   0x6   :  { %2282 = sst [smem:[#allocation10_spill]] %s2266_s5 }
   0x7   :  { %2283 = sst [smem:[#allocation11_spill]] %s2267_s6 }
   0x8   :  { %2284 = sst [smem:[#allocation12_spill]] %s2268_s7 }
   0x9   :  { %20 = vsyncpa [#allocation3], 0 }
   0xa   :  { %22 = vsyncpa [#allocation3 + $0x1], 0  ;;  %s1834_s29 = smov 0   ;;  %s1836_s30 = smov 0  }
   0xb   :  { %s1838_s15 = smov 0   ;;  %s1840_s16 = smov 0  }
   0xc LB: > { %s1855_s17 = sadd.s32 4294967295, %s1755_s16   ;;  %s1482_s18 = sadd.s32 4294967294, %s1755_s16   ;;  %s1755_s16 = sphi %s1840_s16, %s2299_s16   ;;  %s1751_s15 = sphi %s1838_s15, %s2298_s15   ;;  %s1747_s30 = sphi %s1836_s30, %s2297_s30   ;;  %s1743_s29 = sphi %s1834_s29, %s2296_s29  }
   0xd   : > { %s1859_s19 = sadd.s32 1, %s1755_s16   ;;  %s302_s20 = sadd.s32 1, %s1751_s15 }
   0xe   : > { %s299_s21 = ssub.s32 %s1755_s16, %s1859_s19  ;;  %p312_p0 = scmp.ne.s32.totalorder %s1751_s15, %s1747_s30 }
   0xf   : > { %p300_p1 = scmp.eq.s32.totalorder %s299_s21, 0  ;;  %p313_p2 = scmp.eq.s32.totalorder %s1855_s17, 1 }
  0x10   : > { %p318_p3 = scmp.ne.s32.totalorder %s1747_s30, %s1743_s29  ;;  %p319_p4 = scmp.eq.s32.totalorder %s1482_s18, 1 }
  0x11   : > { %s1870_s22 = scalar_select %p300_p1, %s1751_s15, %s302_s20  }
  0x12   : > { %p1872_p5 = por %p313_p2, %p312_p0  ;;  %p1876_p6 = por %p319_p4, %p318_p3 }
  0x13   : > { %p1485_p7 = scmp.ge.s32.totalorder %s1755_s16, 1  ;;  %p440_p8 = scmp.lt.s32.totalorder %s1755_s16, 3 }
  0x15   : > { %p441_p9 = pnand %p1485_p7, %p440_p8 }
  0x16   : > { %s2287_s3 = sld [smem:[#allocation8_spill]] (!%p441_p9)  ;;  %p503_p10 = scmp.lt.s32.totalorder (!%p441_p9), %s1855_s17, 1 }
  0x17   : > { %444 = sbr.rel (%p441_p9) target bundleno = 1072 (0x430), region = 68  ;;  %s2288_s0 = sld [smem:[#allocation5_spill]] (!%p441_p9) }
  0x18   : > { %s2289_s4 = sld [smem:[#allocation9_spill]] (!%p441_p9)  ;;  %s1349_s26 = scalar_lea.hbm (!%p441_p9), %s2273_s12, %s1855_s17 }
  0x19   : > { %s2290_s5 = sld [smem:[#allocation10_spill]] (!%p441_p9) }
  0x1a   : > { %s2291_s1 = sld [smem:[#allocation6_spill]] (!%p441_p9) }
  0x1b   : > { %s2292_s7 = sld [smem:[#allocation12_spill]] (!%p441_p9) }
  0x1c   : > { %v575_v0 = vld [vmem:[%s2287_s3] sm:$0x3]  ;;  %vm629_vm0 = vcmask 1041408   ;;  %s1888_s27 = scalar_select %p503_p10, %s1855_s17, 1  ;;  %vm580_vm1 = vcmask 31744   ;;  %vm1008_vm2 = vcmask 1040384  }
  0x1d   : > { %v631_v1 = vsel %vm629_vm0, %v575_v0, 0  ;;  %vm983_vm3 = vcmask 23552   ;;  %s2276_s3 = sand.u32 1, %s1747_s30   ;;  %s2293_s6 = sld [smem:[#allocation11_spill]]  ;;  %vm1224_vm5 = vcmask 15360  }
  0x1e   : > { %640 = vmatpush.bf16.msra.mxu0 %v631_v1  ;;  %1644 = vmatpush.bf16.msra.mxu2 %v631_v1  ;;  %s1616_s28 = sshll.u32 %s1888_s27, 8  ;;  %v1943_v48 = vld [vmem:[%s2289_s4] ss:$0 sm:$0xff]  ;;  %s2010_s25 = sshll.u32 %s1888_s27, 7 }
  0x1f   : > { %s1894_s21 = scalar_lea.vmem %s2288_s0, %s1616_s28  ;;  %s2135_s4 = scalar_lea.vmem %s2274_s13, %s2010_s25 }
  0x20   : > { %v527_v2 = vld [vmem:[%s1894_s21] sm:$0xff]  ;;  %v528_v3 = vld [vmem:[%s1894_s21 + $0x8] sm:$0xff]  ;;  %v529_v5 = vld [vmem:[%s1894_s21 + $0x10] sm:$0xff]  ;;  %s2018_s18 = scalar_lea.vmem %s2291_s1, %s2010_s25  ;;  %s2294_s2 = sld [smem:[#allocation7_spill]] }
  0x21   : > { %v559_v4 = vpack.c.bf16 %v528_v3, %v527_v2  ;;  %v530_v6 = vld [vmem:[%s1894_s21 + $0x18] sm:$0xff]  ;;  %v531_v8 = vld [vmem:[%s1894_s21 + $0x20] sm:$0xff]  ;;  %v532_v9 = vld [vmem:[%s1894_s21 + $0x28] sm:$0xff]  ;;  %s1353_s28 = sshll.u32 %s1349_s26, 4  ;;  %s1354_s28 = int_to_ptr.hbm [resolvable:$true] %s1353_s28 }
  0x22   : > { %v560_v7 = vpack.c.bf16 %v530_v6, %v529_v5  ;;  %v561_v10 = vpack.c.bf16 %v532_v9, %v531_v8  ;;  %v547_v11 = vld [vmem:[%s1894_s21 + $0xa0] sm:$0xff]  ;;  %v548_v12 = vld [vmem:[%s1894_s21 + $0xa8] sm:$0xff]  ;;  %v533_v14 = vld [vmem:[%s1894_s21 + $0x30] sm:$0xff] }
  0x23   : > { %1494 = vmatmul.msk.bf16.vlgmr.msra.gmra.mxu0 %vm580_vm1, %v559_v4  ;;  %v569_v13 = vpack.c.bf16 %v548_v12, %v547_v11  ;;  %v534_v15 = vld [vmem:[%s1894_s21 + $0x38] sm:$0xff]  ;;  %v549_v17 = vld [vmem:[%s1894_s21 + $0xb0] sm:$0xff]  ;;  %v535_v20 = vld [vmem:[%s1894_s21 + $0x40] sm:$0xff] }
  0x24   : > { %v562_v16 = vpack.c.bf16 %v534_v15, %v533_v14  ;;  %v550_v18 = vld [vmem:[%s1894_s21 + $0xb8] sm:$0xff]  ;;  %v536_v21 = vld [vmem:[%s1894_s21 + $0x48] sm:$0xff]  ;;  %v551_v23 = vld [vmem:[%s1894_s21 + $0xc0] sm:$0xff] }
  0x25   : > { %1504 = vmatmul.msk.bf16.vlgmr.msra.gmra.mxu2 %vm580_vm1, %v569_v13  ;;  %v570_v19 = vpack.c.bf16 %v550_v18, %v549_v17  ;;  %v563_v22 = vpack.c.bf16 %v536_v21, %v535_v20  ;;  %v552_v24 = vld [vmem:[%s1894_s21 + $0xc8] sm:$0xff]  ;;  %v537_v26 = vld [vmem:[%s1894_s21 + $0x50] sm:$0xff]  ;;  %v538_v27 = vld [vmem:[%s1894_s21 + $0x58] sm:$0xff] }
  0x26   : > { %v571_v25 = vpack.c.bf16 %v552_v24, %v551_v23  ;;  %v564_v28 = vpack.c.bf16 %v538_v27, %v537_v26  ;;  %v553_v29 = vld [vmem:[%s1894_s21 + $0xd0] sm:$0xff]  ;;  %v554_v30 = vld [vmem:[%s1894_s21 + $0xd8] sm:$0xff]  ;;  %v539_v32 = vld [vmem:[%s1894_s21 + $0x60] sm:$0xff]  ;;  %s2141_s0 = scalar_lea.vmem %s2294_s2, %s2010_s25 }
  0x27   : > { %v572_v31 = vpack.c.bf16 %v554_v30, %v553_v29  ;;  %v540_v33 = vld [vmem:[%s1894_s21 + $0x68] sm:$0xff]  ;;  %v555_v35 = vld [vmem:[%s1894_s21 + $0xe0] sm:$0xff]  ;;  %v541_v38 = vld [vmem:[%s1894_s21 + $0x70] sm:$0xff] }
  0x28   : > { %v565_v34 = vpack.c.bf16 %v540_v33, %v539_v32  ;;  %v556_v36 = vld [vmem:[%s1894_s21 + $0xe8] sm:$0xff]  ;;  %v542_v39 = vld [vmem:[%s1894_s21 + $0x78] sm:$0xff]  ;;  %v557_v41 = vld [vmem:[%s1894_s21 + $0xf0] sm:$0xff] }
  0x29   : > { %v573_v37 = vpack.c.bf16 %v556_v36, %v555_v35  ;;  %v566_v40 = vpack.c.bf16 %v542_v39, %v541_v38  ;;  %v558_v42 = vld [vmem:[%s1894_s21 + $0xf8] sm:$0xff]  ;;  %v543_v44 = vld [vmem:[%s1894_s21 + $0x80] sm:$0xff]  ;;  %v544_v45 = vld [vmem:[%s1894_s21 + $0x88] sm:$0xff] }
  0x2a   : > { %v574_v43 = vpack.c.bf16 %v558_v42, %v557_v41  ;;  %v567_v46 = vpack.c.bf16 %v544_v45, %v543_v44  ;;  %v545_v54 = vld [vmem:[%s1894_s21 + $0x90] sm:$0xff]  ;;  %v546_v55 = vld [vmem:[%s1894_s21 + $0x98] sm:$0xff]  ;;  %v1624_v35 = vld [vmem:[%s2290_s5 + $0x20] sm:$0xff]  ;;  %s2084_s21 = scalar_lea.vmem [#allocation2], %s2276_s3 }
  0x2b   : > { %v568_v57 = vpack.c.bf16 %v546_v55, %v545_v54  ;;  %v1627_v23 = vld [vmem:[%s2290_s5 + $0x38] sm:$0xff]  ;;  %s1351_s3 = sshll.u32 %s2084_s21, 4  ;;  %s1352_s3 = int_to_ptr.vmem [resolvable:$true] %s1351_s3 }
  0x2c   : > { %865 = vmatpush.bf16.msrb.mxu2 %v1627_v23  ;;  %v1623_v38 = vld [vmem:[%s2290_s5 + $0x18] sm:$0xff] }
  0x33   : > { %1495 = vmatmul.msk.bf16.gmra.mxu0 %vm580_vm1, %v560_v7 }
  0x35   : > { %1505 = vmatmul.msk.bf16.gmra.mxu2 %vm580_vm1, %v570_v19 }
  0x43   : > { %1496 = vmatmul.msk.bf16.gmra.mxu0 %vm580_vm1, %v561_v10 }
  0x45   : > { %1506 = vmatmul.msk.bf16.gmra.mxu2 %vm580_vm1, %v571_v25 }
  0x53   : > { %1497 = vmatmul.msk.bf16.gmra.mxu0 %vm580_vm1, %v562_v16 }
  0x55   : > { %1507 = vmatmul.msk.bf16.gmra.mxu2 %vm580_vm1, %v572_v31  ;;  %v1625_v31 = vld [vmem:[%s2290_s5 + $0x28] sm:$0xff] }
  0x63   : > { %1498 = vmatmul.msk.bf16.gmra.mxu0 %vm580_vm1, %v563_v22 }
  0x65   : > { %1508 = vmatmul.msk.bf16.gmra.mxu2 %vm580_vm1, %v573_v37 }
  0x73   : > { %1499 = vmatmul.msk.bf16.gmra.mxu0 %vm580_vm1, %v564_v28  ;;  %v1626_v28 = vld [vmem:[%s2290_s5 + $0x30] sm:$0xff] }
  0x74   : > { %866 = vmatpush.bf16.msrb.mxu2 %v1626_v28 }
  0x75   : > { %1509 = vmatmul.msk.bf16.gmra.mxu2 %vm580_vm1, %v574_v43 }
  0x78   : > { %867 = vmatpush.bf16.msrb.mxu2 %v1625_v31 }
  0x7c   : > { %868 = vmatpush.bf16.msrb.mxu2 %v1624_v35 }
  0x80   : > { %869 = vmatpush.bf16.msrb.mxu2 %v1623_v38 }
  0x83   : > { %1500 = vmatmul.msk.bf16.gmra.mxu0 %vm580_vm1, %v565_v34 }
  0x93   : > { %1501 = vmatmul.msk.bf16.gmra.mxu0 %vm580_vm1, %v566_v40 }
  0xa0   : > { %v642_v47 = vpop.f32.mrf.mxu0 }
  0xa1   : > { %v643_v49 = vadd.f32 %v1943_v48, %v642_v47 }
  0xa3   : > { %1502 = vmatmul.msk.bf16.gmra.mxu0 %vm580_vm1, %v567_v46  ;;  %v722_v52 = vmax.f32 %v643_v49, 0.0 }
  0xa8   : > { %v644_v50 = vpop.f32.mrf.mxu0  ;;  %v1957_v18 = vpop.f32.mrf.mxu2 }
  0xa9   : > { %v645_v51 = vadd.f32 %v1943_v48, %v644_v50 }
  0xab   : > { %v723_v53 = vmax.f32 %v645_v51, 0.0 }
  0xad   : > { %v754_v56 = vadd.f32 %v723_v53, %v722_v52 }
  0xb0   : > { %v647_v58 = vpop.f32.mrf.mxu0  ;;  %v694_v25 = vpop.f32.mrf.mxu2 }
  0xb1   : > { %v648_v59 = vadd.f32 %v1943_v48, %v647_v58 }
  0xb3   : > { %v724_v60 = vmax.f32 %v648_v59, 0.0  ;;  %1503 = vmatmul.msk.bf16.gmra.mxu0 %vm580_vm1, %v568_v57 }
  0xb5   : > { %v755_v61 = vadd.f32 %v754_v56, %v724_v60 }
  0xb8   : > { %v649_v62 = vpop.f32.mrf.mxu0  ;;  %v697_v27 = vpop.f32.mrf.mxu2 }
  0xb9   : > { %v650_v63 = vadd.f32 %v1943_v48, %v649_v62 }
  0xbb   : > { %v725_v0 = vmax.f32 %v650_v63, 0.0 }
  0xbd   : > { %v756_v1 = vadd.f32 %v755_v61, %v725_v0 }
  0xc0   : > { %v652_v2 = vpop.f32.mrf.mxu0  ;;  %v699_v30 = vpop.f32.mrf.mxu2 }
  0xc1   : > { %v653_v3 = vadd.f32 %v1943_v48, %v652_v2  ;;  %v700_v28 = vadd.f32 %v1943_v48, %v699_v30 }
  0xc3   : > { %v726_v4 = vmax.f32 %v653_v3, 0.0  ;;  %v745_v35 = vmax.f32 %v700_v28, 0.0  ;;  %v964_v28 = vld [vmem:[%s2018_s18 + $0x38] sm:$0xff] }
  0xc5   : > { %v757_v5 = vadd.f32 %v756_v1, %v726_v4 }
  0xc8   : > { %v654_v6 = vpop.f32.mrf.mxu0  ;;  %v1969_v33 = vpop.f32.mrf.mxu2 }
  0xc9   : > { %v655_v7 = vadd.f32 %v1943_v48, %v654_v6  ;;  %v703_v31 = vadd.f32 %v1943_v48, %v1969_v33 }
  0xcb   : > { %v727_v8 = vmax.f32 %v655_v7, 0.0  ;;  %v1622_v7 = vld [vmem:[%s2290_s5 + $0x10] sm:$0xff]  ;;  %v746_v30 = vmax.f32 %v703_v31, 0.0  ;;  %v1633_v31 = vld [vmem:[%s2269_s8 + $0x28] sm:$0xff] }
  0xcc   : > { %870 = vmatpush.bf16.msrb.mxu2 %v1622_v7 }
  0xcd   : > { %v758_v9 = vadd.f32 %v757_v5, %v727_v8 }
  0xd0   : > { %v657_v10 = vpop.f32.mrf.mxu0  ;;  %v704_v37 = vpop.f32.mrf.mxu2 }
  0xd1   : > { %v658_v11 = vadd.f32 %v1943_v48, %v657_v10 }
  0xd3   : > { %v728_v12 = vmax.f32 %v658_v11, 0.0 }
  0xd5   : > { %v759_v13 = vadd.f32 %v758_v9, %v728_v12 }
  0xd8   : > { %v659_v14 = vpop.f32.mrf.mxu0  ;;  %v1977_v40 = vpop.f32.mrf.mxu2 }
  0xd9   : > { %v660_v15 = vadd.f32 %v1943_v48, %v659_v14  ;;  %v693_v14 = vadd.f32 %v1943_v48, %v1957_v18  ;;  %v708_v38 = vadd.f32 %v1943_v48, %v1977_v40  ;;  %v1758_v40 = vmov 65535  }
  0xdb   : > { %v729_v16 = vmax.f32 %v660_v15, 0.0 }
  0xdd   : > { %v760_v17 = vadd.f32 %v759_v13, %v729_v16 }
  0xe0   : > { %v662_v19 = vpop.f32.mrf.mxu0  ;;  %v1981_v44 = vpop.f32.mrf.mxu2 }
  0xe1   : > { %v663_v20 = vadd.f32 %v1943_v48, %v662_v19 }
  0xe3   : > { %v730_v21 = vmax.f32 %v663_v20, 0.0 }
  0xe5   : > { %v761_v22 = vadd.f32 %v760_v17, %v730_v21  ;;  %v695_v17 = vadd.f32 %v1943_v48, %v694_v25  ;;  %v742_v21 = vmax.f32 %v693_v14, 0.0  ;;  %v1620_v25 = vld [vmem:[%s2290_s5] sm:$0xff] }
  0xe8   : > { %v664_v24 = vpop.f32.mrf.mxu0  ;;  %v712_v60 = vpop.f32.mrf.mxu2 }
  0xe9   : > { %v665_v42 = vadd.f32 %v1943_v48, %v664_v24  ;;  %v1621_v24 = vld [vmem:[%s2290_s5 + $0x8] sm:$0xff] }
  0xea   : > { %871 = vmatpush.bf16.msrb.mxu2 %v1621_v24 }
  0xeb   : > { %v731_v45 = vmax.f32 %v665_v42, 0.0  ;;  %v1757_v42 = vmov 256.0  }
  0xec   : > { %1691 = vrcp.f32 %v1757_v42  ;;  %v970_v42 = vld [vmem:[%s2018_s18 + $0x68] sm:$0xff] }
  0xed   : > { %v762_v51 = vadd.f32 %v761_v22, %v731_v45  ;;  %v698_v22 = vadd.f32 %v1943_v48, %v697_v27  ;;  %v705_v27 = vadd.f32 %v1943_v48, %v704_v37  ;;  %v710_v37 = vadd.f32 %v1943_v48, %v1981_v44 }
  0xee   : > { %872 = vmatpush.bf16.msrb.mxu2 %v1620_v25  ;;  %v1009_v45 = vsel %vm1008_vm2, 4294967295, %v1758_v40  ;;  %v1635_v25 = vld [vmem:[%s2269_s8 + $0x38] sm:$0xff]  ;;  %v971_v40 = vld [vmem:[%s2018_s18 + $0x70] sm:$0xff] }
  0xef   : > { %v747_v33 = vmax.f32 %v705_v27, 0.0  ;;  %v749_v44 = vmax.f32 %v710_v37, 0.0  ;;  %v966_v27 = vld [vmem:[%s2018_s18 + $0x48] sm:$0xff] }
  0xf0   : > { %v667_v26 = vpop.f32.mrf.mxu0  ;;  %v714_v13 = vpop.f32.mrf.mxu2 }
  0xf1   : > { %v668_v43 = vadd.f32 %v1943_v48, %v667_v26  ;;  %v743_v26 = vmax.f32 %v695_v17, 0.0 }
  0xf2   : > { %944 = vmatpush.bf16.msra.mxu2 %v1635_v25 }
  0xf3   : > { %v732_v47 = vmax.f32 %v668_v43, 0.0  ;;  %v981_v43 = vld [vmem:[%s2292_s7] sm:$0x3] }
  0xf5   : > { %v763_v54 = vadd.f32 %v762_v51, %v732_v47  ;;  %v958_v47 = vld [vmem:[%s2018_s18 + $0x8] sm:$0xff] }
  0xf8   : > { %v669_v29 = vpop.f32.mrf.mxu0 }
  0xf9   : > { %v670_v46 = vadd.f32 %v1943_v48, %v669_v29  ;;  %v744_v29 = vmax.f32 %v698_v22, 0.0  ;;  %v961_v22 = vld [vmem:[%s2018_s18 + $0x20] sm:$0xff] }
  0xfb   : > { %v733_v52 = vmax.f32 %v670_v46, 0.0  ;;  %v957_v46 = vld [vmem:[%s2018_s18] sm:$0xff] }
  0xfd   : > { %v764_v57 = vadd.f32 %v763_v54, %v733_v52  ;;  %v1010_v52 = vsel %vm629_vm0, %v1009_v45, 0  ;;  %v715_v54 = vadd.f32 %v1943_v48, %v714_v13  ;;  %v972_v45 = vld [vmem:[%s2018_s18 + $0x78] sm:$0xff] }
 0x100   : > { %v672_v32 = vpop.f32.mrf.mxu0 }
 0x101   : > { %v673_v49 = vadd.f32 %v1943_v48, %v672_v32 }
 0x103   : > { %v734_v55 = vmax.f32 %v673_v49, 0.0  ;;  %v748_v49 = vmax.f32 %v708_v38, 0.0  ;;  %v967_v38 = vld [vmem:[%s2018_s18 + $0x50] sm:$0xff] }
 0x105   : > { %v765_v61 = vadd.f32 %v764_v57, %v734_v55 }
 0x108   : > { %v674_v34 = vpop.f32.mrf.mxu0 }
 0x109   : > { %v675_v53 = vadd.f32 %v1943_v48, %v674_v34  ;;  %v717_v34 = vpop.f32.mrf.mxu2 }
 0x10b   : > { %v735_v58 = vmax.f32 %v675_v53, 0.0  ;;  %v1012_v53 = vand.u32 %v1010_v52, %v981_v43 }
 0x10d   : > { %v766_v1 = vadd.f32 %v765_v61, %v735_v58  ;;  %1021 = vmatpush.bf16.msra.mxu3 %v1012_v53  ;;  %v1692_v58 = vpop.eup %1691 }
 0x10e   : > { %vm796_vm4 = vweird.f32 %v1692_v58 }
 0x110   : > { %v677_v36 = vpop.f32.mrf.mxu0 }
 0x111   : > { %v678_v56 = vadd.f32 %v1943_v48, %v677_v36  ;;  %v719_v57 = vpop.f32.mrf.mxu2 }
 0x113   : > { %v736_v62 = vmax.f32 %v678_v56, 0.0  ;;  %v973_v56 = vpack.c.bf16 %v958_v47, %v957_v46  ;;  %v980_v46 = vpack.c.bf16 %v972_v45, %v971_v40  ;;  %v1628_v47 = vld [vmem:[%s2269_s8] sm:$0xff] }
 0x115   : > { %v767_v4 = vadd.f32 %v766_v1, %v736_v62  ;;  %v718_v62 = vadd.f32 %v1943_v48, %v717_v34  ;;  %1574 = vmatmul.msk.bf16.vlgmr.msra.gmra.mxu3 %vm983_vm3, %v973_v56  ;;  %v792_v1 = vmul.f32 256.0, %v1692_v58 }
 0x118   : > { %v679_v39 = vpop.f32.mrf.mxu0 }
 0x119   : > { %v680_v59 = vadd.f32 %v1943_v48, %v679_v39 }
 0x11b   : > { %v737_v2 = vmax.f32 %v680_v59, 0.0 }
 0x11d   : > { %v768_v8 = vadd.f32 %v767_v4, %v737_v2 }
 0x120   : > { %v682_v41 = vpop.f32.mrf.mxu0 }
 0x121   : > { %v683_v63 = vadd.f32 %v1943_v48, %v682_v41 }
 0x123   : > { %v738_v5 = vmax.f32 %v683_v63, 0.0 }
 0x125   : > { %v769_v10 = vadd.f32 %v768_v8, %v738_v5 }
 0x128   : > { %v684_v50 = vpop.f32.mrf.mxu0 }
 0x129   : > { %v685_v3 = vadd.f32 %v1943_v48, %v684_v50  ;;  %v713_v50 = vadd.f32 %v1943_v48, %v712_v60  ;;  %v751_v60 = vmax.f32 %v715_v54, 0.0 }
 0x12b   : > { %v739_v9 = vmax.f32 %v685_v3, 0.0  ;;  %v750_v59 = vmax.f32 %v713_v50, 0.0  ;;  %v752_v3 = vmax.f32 %v718_v62, 0.0 }
 0x12d   : > { %v770_v15 = vadd.f32 %v769_v10, %v739_v9  ;;  %v959_v10 = vld [vmem:[%s2018_s18 + $0x10] sm:$0xff] }
 0x130   : > { %v687_v0 = vpop.f32.mrf.mxu0 }
 0x131   : > { %v688_v6 = vadd.f32 %v1943_v48, %v687_v0  ;;  %v720_v0 = vadd.f32 %v1943_v48, %v719_v57 }
 0x133   : > { %v740_v11 = vmax.f32 %v688_v6, 0.0  ;;  %v753_v5 = vmax.f32 %v720_v0, 0.0  ;;  %v793_v6 = vsub.f32 1.0, %v792_v1  ;;  %v1639_v1 = vld [vmem:[%s2271_s10 + $0x18] sm:$0xff] }
 0x135   : > { %v771_v19 = vadd.f32 %v770_v15, %v740_v11  ;;  %v794_v9 = vmul.f32 %v1692_v58, %v793_v6  ;;  %v960_v11 = vld [vmem:[%s2018_s18 + $0x18] sm:$0xff]  ;;  %v1638_v6 = vld [vmem:[%s2271_s10 + $0x10] sm:$0xff] }
 0x136   : > { %v974_v14 = vpack.c.bf16 %v960_v11, %v959_v10 }
 0x138   : > { %v689_v12 = vpop.f32.mrf.mxu0  ;;  %1575 = vmatmul.msk.bf16.gmra.mxu3 %vm983_vm3, %v974_v14 }
 0x139   : > { %v690_v16 = vadd.f32 %v1943_v48, %v689_v12  ;;  %v795_v48 = vadd.f32 %v1692_v58, %v794_v9  ;;  %v1636_v9 = vld [vmem:[%s2271_s10] sm:$0xff] }
 0x13b   : > { %v741_v20 = vmax.f32 %v690_v16, 0.0  ;;  %v797_v17 = vsel %vm796_vm4, %v1692_v58, %v795_v48  ;;  %v1689_v48 = vld [vmem:[%s2270_s9] ss:$0 sm:$0xff] }
 0x13d   : > { %v772_v23 = vadd.f32 %v771_v19, %v741_v20 }
 0x13f   : > { %v773_v18 = vadd.f32 %v772_v23, %v742_v21  ;;  %v962_v23 = vld [vmem:[%s2018_s18 + $0x28] sm:$0xff] }
 0x140   : > { %v975_v24 = vpack.c.bf16 %v962_v23, %v961_v22 }
 0x141   : > { %v774_v32 = vadd.f32 %v773_v18, %v743_v26  ;;  %v963_v26 = vld [vmem:[%s2018_s18 + $0x30] sm:$0xff] }
 0x142   : > { %v976_v18 = vpack.c.bf16 %v964_v28, %v963_v26 }
 0x143   : > { %v775_v36 = vadd.f32 %v774_v32, %v744_v29  ;;  %v1634_v29 = vld [vmem:[%s2269_s8 + $0x30] sm:$0xff]  ;;  %v965_v32 = vld [vmem:[%s2018_s18 + $0x40] sm:$0xff] }
 0x144   : > { %945 = vmatpush.bf16.msra.mxu2 %v1634_v29  ;;  %v977_v34 = vpack.c.bf16 %v966_v27, %v965_v32 }
 0x145   : > { %v776_v39 = vadd.f32 %v775_v36, %v745_v35  ;;  %v1632_v35 = vld [vmem:[%s2269_s8 + $0x20] sm:$0xff]  ;;  %v1631_v36 = vld [vmem:[%s2269_s8 + $0x18] sm:$0xff] }
 0x147   : > { %v777_v41 = vadd.f32 %v776_v39, %v746_v30  ;;  %v1630_v30 = vld [vmem:[%s2269_s8 + $0x10] sm:$0xff]  ;;  %v968_v39 = vld [vmem:[%s2018_s18 + $0x58] sm:$0xff] }
 0x148   : > { %1576 = vmatmul.msk.bf16.gmra.mxu3 %vm983_vm3, %v975_v24  ;;  %946 = vmatpush.bf16.msra.mxu2 %v1633_v31  ;;  %v978_v37 = vpack.c.bf16 %v968_v39, %v967_v38 }
 0x149   : > { %v778_v51 = vadd.f32 %v777_v41, %v747_v33  ;;  %v1629_v33 = vld [vmem:[%s2269_s8 + $0x8] sm:$0xff]  ;;  %v969_v41 = vld [vmem:[%s2018_s18 + $0x60] sm:$0xff]  ;;  %s1707_s18 = sshra.s32 %s1354_s28, 4  ;;  %s1708_s18 = int_to_ptr.hbm [resolvable:$true] %s1707_s18 }
 0x14a   : > { %v979_v43 = vpack.c.bf16 %v970_v42, %v969_v41  ;;  %p1714_p0 = scmp.lt.s32.totalorder %s1708_s18, %s2273_s12 }
 0x14b   : > { %v779_v55 = vadd.f32 %v778_v51, %v748_v49  ;;  %v816_v51 = vld [vmem:[%s2293_s6] sm:$0x1]  ;;  %s1713_s6 = scalar_lea.hbm %s2273_s12, 2 }
 0x14c   : > { %947 = vmatpush.bf16.msra.mxu2 %v1632_v35 }
 0x14d   : > { %v780_v61 = vadd.f32 %v779_v55, %v749_v44 }
 0x14f   : > { %v781_v63 = vadd.f32 %v780_v61, %v750_v59  ;;  %v1643_v59 = vld [vmem:[%s2271_s10 + $0x38] sm:$0xff]  ;;  %v1642_v61 = vld [vmem:[%s2271_s10 + $0x30] sm:$0xff] }
 0x150   : > { %948 = vmatpush.bf16.msra.mxu2 %v1631_v36  ;;  %1175 = vmatpush.bf16.msra.mxu1 %v1643_v59 }
 0x151   : > { %v782_v2 = vadd.f32 %v781_v63, %v751_v60  ;;  %v1641_v60 = vld [vmem:[%s2271_s10 + $0x28] sm:$0xff]  ;;  %v1640_v63 = vld [vmem:[%s2271_s10 + $0x20] sm:$0xff] }
 0x153   : > { %v783_v4 = vadd.f32 %v782_v2, %v752_v3 }
 0x154   : > { %949 = vmatpush.bf16.msra.mxu2 %v1630_v30  ;;  %1176 = vmatpush.bf16.msra.mxu1 %v1642_v61 }
 0x155   : > { %v784_v7 = vadd.f32 %v783_v4, %v753_v5 }
 0x157   : > { %v785_v8 = vrot.slane %v784_v7, 4 }
 0x158   : > { %1577 = vmatmul.msk.bf16.gmra.mxu3 %vm983_vm3, %v976_v18  ;;  %950 = vmatpush.bf16.msra.mxu2 %v1629_v33 }
 0x159   : > { %v786_v12 = vadd.f32 %v785_v8, %v784_v7  ;;  %1177 = vmatpush.bf16.msra.mxu1 %v1641_v60  ;;  %v1637_v8 = vld [vmem:[%s2271_s10 + $0x8] sm:$0xff] }
 0x15b   : > { %v787_v13 = vrot.slane %v786_v12, 2 }
 0x15c   : > { %951 = vmatpush.bf16.msra.mxu2 %v1628_v47 }
 0x15d   : > { %v788_v15 = vadd.f32 %v787_v13, %v786_v12  ;;  %1178 = vmatpush.bf16.msra.mxu1 %v1640_v63 }
 0x15f   : > { %v789_v16 = vrot.slane %v788_v15, 1 }
 0x161   : > { %v790_v19 = vadd.f32 %v789_v16, %v788_v15  ;;  %1179 = vmatpush.bf16.msra.mxu1 %v1639_v1 }
 0x163   : > { %v798_v20 = vmul.f32 %v797_v17, %v790_v19 }
 0x165   : > { %v799_v21 = vpack.c.bf16 %v798_v20, %v798_v20  ;;  %1180 = vmatpush.bf16.msra.mxu1 %v1638_v6 }
 0x167   : > { %873 = vmatmul.bf16.vlgmr.msrb.gmra.mxu2 %v799_v21 }
 0x168   : > { %1578 = vmatmul.msk.bf16.gmra.mxu3 %vm983_vm3, %v977_v34 }
 0x169   : > { %1181 = vmatpush.bf16.msra.mxu1 %v1637_v8 }
 0x16d   : > { %1182 = vmatpush.bf16.msra.mxu1 %v1636_v9 }
 0x178   : > { %1579 = vmatmul.msk.bf16.gmra.mxu3 %vm983_vm3, %v978_v37 }
 0x188   : > { %1580 = vmatmul.msk.bf16.gmra.mxu3 %vm983_vm3, %v979_v43 }
 0x198   : > { %1581 = vmatmul.msk.bf16.gmra.mxu3 %vm983_vm3, %v980_v46  ;;  %v1023_v49 = vpop.f32.mrf.mxu3 }
 0x1a0   : > { %v1025_v50 = vpop.f32.mrf.mxu3 }
 0x1bb   : > { %v1028_v54 = vpop.f32.mrf.mxu3 }
 0x1c3   : > { %v1030_v56 = vpop.f32.mrf.mxu3 }
 0x1cb   : > { %v2087_v57 = vpop.f32.mrf.mxu3 }
 0x1d3   : > { %v2089_v58 = vpop.f32.mrf.mxu3 }
 0x1db   : > { %v2097_v62 = vpop.f32.mrf.mxu3 }
 0x1e3   : > { %v2105_v0 = vpop.f32.mrf.mxu3 }
 0x1ea   : > { %v874_v52 = vpop.f32.mrf.mxu2 }
 0x1eb   : > { %v875_v53 = vadd.f32 %v874_v52, %v816_v51  ;;  %v1043_v2 = vpop.f32.mrf.mxu3 }
 0x1ed   : > { %878 = vst [vmem:[%s2084_s21] sm:$0x1] %v875_v53  ;;  %v879_v44 = vpack.c.bf16 %v875_v53, %v875_v53 }
 0x1ef   : > { %952 = vmatmul.bf16.vlgmr.msra.gmra.mxu2 %v879_v44 }
 0x1f2   : > { %v876_v55 = vpop.f32.mrf.mxu2 }
 0x1f3   : > { %v1045_v3 = vpop.f32.mrf.mxu3 }
 0x1fb   : > { %v1048_v4 = vpop.f32.mrf.mxu3 }
 0x203   : > { %v1050_v5 = vpop.f32.mrf.mxu3 }
 0x20b   : > { %v1053_v7 = vpop.f32.mrf.mxu3 }
 0x213   : > { %v1055_v10 = vpop.f32.mrf.mxu3 }
 0x21b   : > { %v1058_v11 = vpop.f32.mrf.mxu3 }
 0x223   : > { %v1060_v13 = vpop.f32.mrf.mxu3 }
 0x272   : > { %v953_v12 = vpop.f32.mrf.mxu2 }
 0x273   : > { %v982_v14 = vperm.slane %v953_v12, 0 }
 0x275   : > { %v1061_v15 = vadd.f32 %v1060_v13, %v982_v14  ;;  %v1024_v16 = vadd.f32 %v1023_v49, %v982_v14  ;;  %v1026_v17 = vadd.f32 %v1025_v50, %v982_v14  ;;  %v1044_v28 = vadd.f32 %v1043_v2, %v982_v14 }
 0x276   : > { %v1046_v18 = vadd.f32 %v1045_v3, %v982_v14  ;;  %v1029_v25 = vadd.f32 %v1028_v54, %v982_v14  ;;  %v1049_v29 = vadd.f32 %v1048_v4, %v982_v14  ;;  %v1031_v31 = vadd.f32 %v1030_v56, %v982_v14 }
 0x277   : > { %v1082_v19 = vadd.f32 %v1689_v48, %v1061_v15  ;;  %v1067_v20 = vadd.f32 %v1689_v48, %v1024_v16  ;;  %v1068_v21 = vadd.f32 %v1689_v48, %v1026_v17  ;;  %v1075_v32 = vadd.f32 %v1689_v48, %v1044_v28 }
 0x278   : > { %v1076_v27 = vadd.f32 %v1689_v48, %v1046_v18  ;;  %v1051_v34 = vadd.f32 %v1050_v5, %v982_v14  ;;  %v1077_v35 = vadd.f32 %v1689_v48, %v1049_v29  ;;  %v1054_v36 = vadd.f32 %v1053_v7, %v982_v14 }
 0x279   : > { %v1083_v22 = vmax.f32 %v1067_v20, 0.0  ;;  %v1084_v23 = vmax.f32 %v1068_v21, 0.0  ;;  %v1056_v30 = vadd.f32 %v1055_v10, %v982_v14  ;;  %v1059_v38 = vadd.f32 %v1058_v11, %v982_v14 }
 0x27a   : > { %v955_v24 = vpop.f32.mrf.mxu2  ;;  %v1098_v39 = vmax.f32 %v1082_v19, 0.0  ;;  %v1091_v33 = vmax.f32 %v1075_v32, 0.0  ;;  %v1092_v37 = vmax.f32 %v1076_v27, 0.0  ;;  %v1078_v41 = vadd.f32 %v1689_v48, %v1051_v34  ;;  %v1244_v32 = vld [vmem:[%s2141_s0 + $0x18] sm:$0xff] }
 0x27b   : > { %v1099_v26 = vpack.c.bf16 %v1084_v23, %v1083_v22  ;;  %v1093_v42 = vmax.f32 %v1077_v35, 0.0  ;;  %v1079_v43 = vadd.f32 %v1689_v48, %v1054_v36  ;;  %v1080_v40 = vadd.f32 %v1689_v48, %v1056_v30  ;;  %v1243_v24 = vld [vmem:[%s2141_s0 + $0x10] sm:$0xff] }
 0x27c   : > { %v1081_v45 = vadd.f32 %v1689_v48, %v1059_v38  ;;  %v1103_v46 = vpack.c.bf16 %v1092_v37, %v1091_v33  ;;  %v1094_v47 = vmax.f32 %v1078_v41, 0.0  ;;  %v1069_v52 = vadd.f32 %v1689_v48, %v1029_v25 }
 0x27d   : > { %1183 = vmatmul.bf16.vlgmr.msra.gmra.mxu1 %v1099_v26  ;;  %v1095_v49 = vmax.f32 %v1079_v43, 0.0  ;;  %v1096_v50 = vmax.f32 %v1080_v40, 0.0  ;;  %v1070_v53 = vadd.f32 %v1689_v48, %v1031_v31  ;;  %v1034_v60 = vadd.f32 %v2087_v57, %v982_v14  ;;  %v2129_v57 = vld [vmem:[%s2272_s11] ss:$0 sm:$0xff] }
 0x27e   : > { %v1097_v51 = vmax.f32 %v1081_v45, 0.0  ;;  %v1104_v44 = vpack.c.bf16 %v1094_v47, %v1093_v42  ;;  %v1085_v56 = vmax.f32 %v1069_v52, 0.0  ;;  %v1036_v63 = vadd.f32 %v2089_v58, %v982_v14 }
 0x27f   : > { %v1105_v54 = vpack.c.bf16 %v1096_v50, %v1095_v49  ;;  %v1086_v59 = vmax.f32 %v1070_v53, 0.0  ;;  %v1071_v1 = vadd.f32 %v1689_v48, %v1034_v60  ;;  %v1039_v6 = vadd.f32 %v2097_v62, %v982_v14  ;;  %v1247_v60 = vld [vmem:[%s2141_s0 + $0x30] sm:$0xff] }
 0x280   : > { %v1106_v55 = vpack.c.bf16 %v1098_v39, %v1097_v51  ;;  %v1072_v2 = vadd.f32 %v1689_v48, %v1036_v63  ;;  %v1041_v7 = vadd.f32 %v2105_v0, %v982_v14  ;;  %v1241_v0 = vld [vmem:[%s2141_s0] sm:$0xff] }
 0x281   : > { %v1100_v61 = vpack.c.bf16 %v1086_v59, %v1085_v56  ;;  %v1087_v3 = vmax.f32 %v1071_v1, 0.0  ;;  %v1073_v8 = vadd.f32 %v1689_v48, %v1039_v6  ;;  %v1245_v39 = vld [vmem:[%s2141_s0 + $0x20] sm:$0xff] }
 0x282   : > { %v1088_v4 = vmax.f32 %v1072_v2, 0.0  ;;  %v1074_v9 = vadd.f32 %v1689_v48, %v1041_v7  ;;  %v1242_v48 = vld [vmem:[%s2141_s0 + $0x8] sm:$0xff] }
 0x283   : > { %v1089_v10 = vmax.f32 %v1073_v8, 0.0  ;;  %v1250_v8 = vld [vmem:[%s2141_s0 + $0x48] sm:$0xff] }
 0x284   : > { %v1101_v5 = vpack.c.bf16 %v1088_v4, %v1087_v3  ;;  %v1090_v11 = vmax.f32 %v1074_v9, 0.0  ;;  %v1248_v3 = vld [vmem:[%s2141_s0 + $0x38] sm:$0xff] }
 0x286   : > { %v1102_v12 = vpack.c.bf16 %v1090_v11, %v1089_v10  ;;  %v1251_v11 = vld [vmem:[%s2141_s0 + $0x50] sm:$0xff] }
 0x28d   : > { %1188 = vmatmul.bf16.gmra.mxu1 %v1100_v61  ;;  %v1246_v61 = vld [vmem:[%s2141_s0 + $0x28] sm:$0xff] }
 0x29d   : > { %1193 = vmatmul.bf16.gmra.mxu1 %v1101_v5  ;;  %v1249_v5 = vld [vmem:[%s2141_s0 + $0x40] sm:$0xff] }
 0x2ad   : > { %1198 = vmatmul.bf16.gmra.mxu1 %v1102_v12 }
 0x2bd   : > { %1203 = vmatmul.bf16.gmra.mxu1 %v1103_v46 }
 0x2cd   : > { %1208 = vmatmul.bf16.gmra.mxu1 %v1104_v44 }
 0x2dd   : > { %1213 = vmatmul.bf16.gmra.mxu1 %v1105_v54 }
 0x2ed   : > { %1218 = vmatmul.bf16.gmra.mxu1 %v1106_v55 }
 0x2fa   : > { %v1184_v58 = vpop.f32.mrf.mxu1 }
 0x2fb   : > { %v1185_v62 = vadd.f32 %v2129_v57, %v1184_v58 }
 0x2fd   : > { %1225 = vst.msk [vmem:[%s2135_s4] sm:$0xff] %vm1224_vm5, %v1185_v62  ;;  %v1257_v13 = vsub.f32 %v1185_v62, %v1241_v0 }
 0x2ff   : > { %v1273_v16 = vmul.f32 %v1257_v13, %v1257_v13 }
 0x301   : > { %v1289_v20 = vsel %vm1224_vm5, %v1273_v16, 0.0 }
 0x302   : > { %v1186_v14 = vpop.f32.mrf.mxu1 }
 0x303   : > { %v1187_v15 = vadd.f32 %v2129_v57, %v1186_v14  ;;  %v1252_v14 = vld [vmem:[%s2141_s0 + $0x58] sm:$0xff] }
 0x305   : > { %1226 = vst.msk [vmem:[%s2135_s4 + $0x8] sm:$0xff] %vm1224_vm5, %v1187_v15  ;;  %v1258_v17 = vsub.f32 %v1187_v15, %v1242_v48 }
 0x307   : > { %v1274_v19 = vmul.f32 %v1258_v17, %v1258_v17 }
 0x309   : > { %v1290_v21 = vsel %vm1224_vm5, %v1274_v19, 0.0  ;;  %v1253_v19 = vld [vmem:[%s2141_s0 + $0x60] sm:$0xff] }
 0x30a   : > { %v1291_v22 = vadd.f32 %v1290_v21, %v1289_v20  ;;  %v1189_v23 = vpop.f32.mrf.mxu1 }
 0x30b   : > { %v1190_v26 = vadd.f32 %v2129_v57, %v1189_v23 }
 0x30d   : > { %1227 = vst.msk [vmem:[%s2135_s4 + $0x10] sm:$0xff] %vm1224_vm5, %v1190_v26  ;;  %v1259_v28 = vsub.f32 %v1190_v26, %v1243_v24  ;;  %v1254_v24 = vld [vmem:[%s2141_s0 + $0x68] sm:$0xff] }
 0x30f   : > { %v1275_v18 = vmul.f32 %v1259_v28, %v1259_v28 }
 0x311   : > { %v1292_v25 = vsel %vm1224_vm5, %v1275_v18, 0.0 }
 0x312   : > { %v1293_v29 = vadd.f32 %v1292_v25, %v1291_v22  ;;  %v1191_v31 = vpop.f32.mrf.mxu1 }
 0x313   : > { %v1192_v27 = vadd.f32 %v2129_v57, %v1191_v31  ;;  %v1255_v31 = vld [vmem:[%s2141_s0 + $0x70] sm:$0xff] }
 0x315   : > { %1228 = vst.msk [vmem:[%s2135_s4 + $0x18] sm:$0xff] %vm1224_vm5, %v1192_v27  ;;  %v1260_v34 = vsub.f32 %v1192_v27, %v1244_v32 }
 0x317   : > { %v1276_v35 = vmul.f32 %v1260_v34, %v1260_v34 }
 0x319   : > { %v1294_v36 = vsel %vm1224_vm5, %v1276_v35, 0.0 }
 0x31a   : > { %v1295_v30 = vadd.f32 %v1294_v36, %v1293_v29  ;;  %v1194_v38 = vpop.f32.mrf.mxu1 }
 0x31b   : > { %v1195_v33 = vadd.f32 %v2129_v57, %v1194_v38 }
 0x31d   : > { %1229 = vst.msk [vmem:[%s2135_s4 + $0x20] sm:$0xff] %vm1224_vm5, %v1195_v33  ;;  %v1261_v37 = vsub.f32 %v1195_v33, %v1245_v39 }
 0x31f   : > { %v1277_v41 = vmul.f32 %v1261_v37, %v1261_v37 }
 0x321   : > { %v1296_v42 = vsel %vm1224_vm5, %v1277_v41, 0.0 }
 0x322   : > { %v1297_v43 = vadd.f32 %v1296_v42, %v1295_v30  ;;  %v1196_v40 = vpop.f32.mrf.mxu1 }
 0x323   : > { %v1197_v45 = vadd.f32 %v2129_v57, %v1196_v40 }
 0x325   : > { %1230 = vst.msk [vmem:[%s2135_s4 + $0x28] sm:$0xff] %vm1224_vm5, %v1197_v45  ;;  %v1262_v1 = vsub.f32 %v1197_v45, %v1246_v61 }
 0x327   : > { %v1278_v6 = vmul.f32 %v1262_v1, %v1262_v1 }
 0x329   : > { %v1298_v58 = vsel %vm1224_vm5, %v1278_v6, 0.0 }
 0x32a   : > { %v1199_v46 = vpop.f32.mrf.mxu1  ;;  %v1299_v17 = vadd.f32 %v1298_v58, %v1297_v43 }
 0x32b   : > { %v1200_v47 = vadd.f32 %v2129_v57, %v1199_v46 }
 0x32d   : > { %1231 = vst.msk [vmem:[%s2135_s4 + $0x30] sm:$0xff] %vm1224_vm5, %v1200_v47  ;;  %v1263_v4 = vsub.f32 %v1200_v47, %v1247_v60  ;;  %v1256_v47 = vld [vmem:[%s2141_s0 + $0x78] sm:$0xff]  ;;  %s1709_s0 = scalar_lea.hbm %s1708_s18, 1 }
 0x32e   : > { %p1710_p11 = scmp.ne.s32.totalorder %s1708_s18, %s1709_s0  ;;  %p1715_p1 = scmp.lt.s32.totalorder %s1713_s6, %s1709_s0 }
 0x32f   : > { %v1279_v9 = vmul.f32 %v1263_v4, %v1263_v4 }
 0x330   : > { %p1711_p12 = pnand %p1710_p11, %p1872_p5  ;;  %p1716_p2 = por %p1715_p1, %p1714_p0 }
 0x331   : > { %v1300_v48 = vsel %vm1224_vm5, %v1279_v9, 0.0 }
 0x332   : > { %v1201_v49 = vpop.f32.mrf.mxu1  ;;  %v1301_v23 = vadd.f32 %v1300_v48, %v1299_v17  ;;  %p1712_p13 = pneg %p1711_p12 }
 0x333   : > { %v1202_v50 = vadd.f32 %v2129_v57, %v1201_v49 }
 0x334   : > { %p1717_p3 = pnand %p1716_p2, %p1712_p13 }
 0x335   : > { %1232 = vst.msk [vmem:[%s2135_s4 + $0x38] sm:$0xff] %vm1224_vm5, %v1202_v50  ;;  %v1264_v7 = vsub.f32 %v1202_v50, %v1248_v3 }
 0x337   : > { %v1280_v62 = vmul.f32 %v1264_v7, %v1264_v7 }
 0x339   : > { %v1302_v20 = vsel %vm1224_vm5, %v1280_v62, 0.0 }
 0x33a   : > { %v1204_v51 = vpop.f32.mrf.mxu1  ;;  %v1303_v25 = vadd.f32 %v1302_v20, %v1301_v23 }
 0x33b   : > { %v1205_v52 = vadd.f32 %v2129_v57, %v1204_v51 }
 0x33d   : > { %1233 = vst.msk [vmem:[%s2135_s4 + $0x40] sm:$0xff] %vm1224_vm5, %v1205_v52  ;;  %v1265_v10 = vsub.f32 %v1205_v52, %v1249_v5 }
 0x33f   : > { %v1281_v15 = vmul.f32 %v1265_v10, %v1265_v10 }
 0x341   : > { %v1304_v26 = vsel %vm1224_vm5, %v1281_v15, 0.0 }
 0x342   : > { %v1206_v53 = vpop.f32.mrf.mxu1  ;;  %v1305_v36 = vadd.f32 %v1304_v26, %v1303_v25 }
 0x343   : > { %v1207_v44 = vadd.f32 %v2129_v57, %v1206_v53 }
 0x345   : > { %1234 = vst.msk [vmem:[%s2135_s4 + $0x48] sm:$0xff] %vm1224_vm5, %v1207_v44  ;;  %v1266_v0 = vsub.f32 %v1207_v44, %v1250_v8 }
 0x347   : > { %v1282_v21 = vmul.f32 %v1266_v0, %v1266_v0 }
 0x349   : > { %v1306_v32 = vsel %vm1224_vm5, %v1282_v21, 0.0 }
 0x34a   : > { %v1209_v54 = vpop.f32.mrf.mxu1  ;;  %v1307_v33 = vadd.f32 %v1306_v32, %v1305_v36 }
 0x34b   : > { %v1210_v55 = vadd.f32 %v2129_v57, %v1209_v54 }
 0x34d   : > { %1235 = vst.msk [vmem:[%s2135_s4 + $0x50] sm:$0xff] %vm1224_vm5, %v1210_v55  ;;  %v1267_v16 = vsub.f32 %v1210_v55, %v1251_v11 }
 0x34f   : > { %v1283_v28 = vmul.f32 %v1267_v16, %v1267_v16 }
 0x351   : > { %v1308_v30 = vsel %vm1224_vm5, %v1283_v28, 0.0 }
 0x352   : > { %v1211_v56 = vpop.f32.mrf.mxu1  ;;  %v1309_v42 = vadd.f32 %v1308_v30, %v1307_v33 }
 0x353   : > { %v1212_v59 = vadd.f32 %v2129_v57, %v1211_v56 }
 0x355   : > { %1236 = vst.msk [vmem:[%s2135_s4 + $0x58] sm:$0xff] %vm1224_vm5, %v1212_v59  ;;  %v1268_v22 = vsub.f32 %v1212_v59, %v1252_v14 }
 0x357   : > { %v1284_v27 = vmul.f32 %v1268_v22, %v1268_v22 }
 0x359   : > { %v1310_v37 = vsel %vm1224_vm5, %v1284_v27, 0.0 }
 0x35a   : > { %v1214_v63 = vpop.f32.mrf.mxu1  ;;  %v1311_v45 = vadd.f32 %v1310_v37, %v1309_v42 }
 0x35b   : > { %v1215_v2 = vadd.f32 %v2129_v57, %v1214_v63 }
 0x35d   : > { %1237 = vst.msk [vmem:[%s2135_s4 + $0x60] sm:$0xff] %vm1224_vm5, %v1215_v2  ;;  %v1269_v18 = vsub.f32 %v1215_v2, %v1253_v19 }
 0x35f   : > { %v1285_v38 = vmul.f32 %v1269_v18, %v1269_v18 }
 0x361   : > { %v1312_v43 = vsel %vm1224_vm5, %v1285_v38, 0.0 }
 0x362   : > { %v1216_v12 = vpop.f32.mrf.mxu1  ;;  %v1313_v51 = vadd.f32 %v1312_v43, %v1311_v45 }
 0x363   : > { %v1217_v13 = vadd.f32 %v2129_v57, %v1216_v12 }
 0x365   : > { %1238 = vst.msk [vmem:[%s2135_s4 + $0x68] sm:$0xff] %vm1224_vm5, %v1217_v13  ;;  %v1270_v34 = vsub.f32 %v1217_v13, %v1254_v24 }
 0x367   : > { %v1286_v41 = vmul.f32 %v1270_v34, %v1270_v34 }
 0x369   : > { %v1314_v50 = vsel %vm1224_vm5, %v1286_v41, 0.0 }
 0x36a   : > { %v1219_v29 = vpop.f32.mrf.mxu1  ;;  %v1315_v44 = vadd.f32 %v1314_v50, %v1313_v51 }
 0x36b   : > { %v1220_v35 = vadd.f32 %v2129_v57, %v1219_v29 }
 0x36d   : > { %1239 = vst.msk [vmem:[%s2135_s4 + $0x70] sm:$0xff] %vm1224_vm5, %v1220_v35  ;;  %v1271_v39 = vsub.f32 %v1220_v35, %v1255_v31 }
 0x36f   : > { %v1287_v40 = vmul.f32 %v1271_v39, %v1271_v39 }
 0x371   : > { %v1316_v53 = vsel %vm1224_vm5, %v1287_v40, 0.0 }
 0x372   : > { %v1221_v46 = vpop.f32.mrf.mxu1  ;;  %v1317_v55 = vadd.f32 %v1316_v53, %v1315_v44 }
 0x373   : > { %v1222_v49 = vadd.f32 %v2129_v57, %v1221_v46 }
 0x375   : > { %1240 = vst.msk [vmem:[%s2135_s4 + $0x78] sm:$0xff] %vm1224_vm5, %v1222_v49  ;;  %v1272_v52 = vsub.f32 %v1222_v49, %v1256_v47  ;;  %s2295_s4 = sand.u32 1, %s1747_s30  }
 0x376   : > { %s1333_s20 = scalar_lea.sflag [#allocation3], %s2295_s4 }
 0x377   : > { %v1288_v54 = vmul.f32 %v1272_v52, %v1272_v52 }
 0x379   : > { %v1318_v56 = vsel %vm1224_vm5, %v1288_v54, 0.0 }
 0x37a   : > { %v1319_v59 = vadd.f32 %v1318_v56, %v1317_v55 }
 0x37c   : > { %1320 = vadd.xlane.f32.xlu0 %v1319_v59 }
 0x37d   : > { %1720 = shalt.err (!%p1717_p3)
}
 0x37e   : > { %1647 = dma.vmem_to_hbm [thread:$0]  (%p1872_p5), %s1352_s3, 16, %s1354_s28, %s1333_s20   ;;  %vm1330_vm6 = vcmask 0  }
 0x37f   : > { %s525_s7 = scalar_lea.vmem %s2275_s14, %s1888_s27 }
 0x3ef   : > { %v1321_v57 = vpop.xlane.xlu0 %1320 }
 0x3f0   : > { %v1322_v61 = vrot.slane %v1321_v57, 4 }
 0x3f2   : > { %v1323_v60 = vadd.f32 %v1322_v61, %v1321_v57 }
 0x3f4   : > { %v1324_v63 = vrot.slane %v1323_v60, 2 }
 0x3f6   : > { %v1325_v1 = vadd.f32 %v1324_v63, %v1323_v60 }
 0x3f8   : > { %v1326_v2 = vrot.slane %v1325_v1, 1 }
 0x3fa   : > { %v1327_v3 = vadd.f32 %v1326_v2, %v1325_v1 }
 0x3fc   : > { %1645 = vpush %v1327_v3 }
 0x42d   : > { %s1646_s6 = spop %1645 }
 0x42e   : > { %v1329_v4 = vstv %s1646_s6 }
 0x42f   : > { %1331 = vst.msk [vmem:[%s525_s7] sm:$0x1] %vm1330_vm6, %v1329_v4 }
 0x430 PF: > { %p1653_p4 = scmp.ge.s32.totalorder %s1755_s16, 2  ;;  %s1371_s17 = sand.u32 1, %s1743_s29  }
 0x431   : > { %s1372_s23 = scalar_lea.sflag [#allocation3], %s1371_s17 }
 0x432   : > { %p1650_p5 = pnand %p1653_p4, %p1876_p6 }
 0x434   : > { %p1651_p7 = pneg %p1650_p5 }
 0x436   : > { %1738 = dma.done.wait (%p1651_p7), %s1372_s23, 16  }
 0x437   : > { %1740 = vsyncadd (%p1651_p7), %s1372_s23, 4294967280  ;;  %p25_p8 = scmp.ge.s32.totalorder %s1859_s19, 4   ;;  %s2296_s29 = smov %s1747_s30 }
 0x438   : > { %s2297_s30 = smov %s1751_s15  ;;  %s2298_s15 = smov %s1870_s22 }
 0x439   : > { %s2299_s16 = smov %s1859_s19  ;;  %27 = sbr.rel (!%p25_p8) target bundleno = 12 (0xc), region = 133 }
 0x43e   :  { %1391 = vsyncpa [#allocation3], 1 }
 0x43f   :  { %1393 = vsyncpa [#allocation3 + $0x1], 1 }

</bundles_post_ra>
